<compile_context>
chip_gen: v7x
topology: tpu7x:2x2x1
jax: 0.10.0
libtpu: 0.0.40
codegen_flags: <defaults>
</compile_context>

<pallas_src>
import functools

import jax
import jax.numpy as jnp
from jax.experimental import pallas as pl
from jax.experimental.pallas import tpu as pltpu

_EPS = 1e-5

# ~2 MiB blocks: double-buffered in+out = 8 MiB, plus a few block-sized f32
# temporaries inside the kernel, stays comfortably under the 32 MiB scoped
# VMEM limit (and v7x's 64 MiB physical VMEM).
_BLOCK_BYTE_BUDGET = 2 * 1024 * 1024
# Only force a 2-way grid split (to feed v7x's 2 TensorCores) when one block
# would be at least this big; below that the extra step is pure overhead.
_MIN_SPLIT_BYTES = 512 * 1024
_VMEM_LIMIT = 32 * 1024 * 1024


# ---------------------------------------------------------------------------
# Kernels
# ---------------------------------------------------------------------------

def _bias_free_ln_kernel(x_ref, w_ref, o_ref):
    """Plain per-row path: block is (TM, C), reduction over the whole last axis."""
    x = x_ref[...].astype(jnp.float32)
    mu = jnp.mean(x, axis=-1, keepdims=True)
    xc = x - mu
    var = jnp.mean(xc * xc, axis=-1, keepdims=True)          # unbiased=False
    y = x * jax.lax.rsqrt(var + _EPS) * w_ref[...].astype(jnp.float32)
    o_ref[...] = y.astype(o_ref.dtype)


def _seg_sum(v, seg, exact_bf16=False):
    """Segmented (block-diagonal) row-sum on the MXU.

    MXU operands are bf16, so split v into a bf16-exact high part plus a small
    residual and accumulate in f32; result stays f32-accurate.  When `v` is
    already exactly bf16-representable, the residual is zero and skipped.
    """
    v_hi = v.astype(jnp.bfloat16)
    out = jnp.dot(v_hi, seg, preferred_element_type=jnp.float32)
    if not exact_bf16:
        v_lo = (v - v_hi.astype(jnp.float32)).astype(jnp.bfloat16)
        out = out + jnp.dot(v_lo, seg, preferred_element_type=jnp.float32)
    return out


def _bias_free_ln_packed_kernel(x_ref, w_ref, seg_ref, o_ref, *, c, x_exact_bf16):
    """Lane-dense path: each (TM, 128) row packs P = 128//c independent length-c
    channel vectors.  Segmented mean/var via a block-diagonal-ones matmul keeps
    the data lane-dense (full-width, unmasked 128-lane stores)."""
    x = x_ref[...].astype(jnp.float32)
    seg = seg_ref[...]                       # (128, 128) bf16 block-diag ones
    inv_c = jnp.float32(1.0 / c)
    mu = _seg_sum(x, seg, exact_bf16=x_exact_bf16) * inv_c    # per-lane seg mean
    xc = x - mu
    var = _seg_sum(xc * xc, seg) * inv_c                      # unbiased=False
    y = x * jax.lax.rsqrt(var + _EPS) * w_ref[...].astype(jnp.float32)
    o_ref[...] = y.astype(o_ref.dtype)


# ---------------------------------------------------------------------------
# Tiling helpers
# ---------------------------------------------------------------------------

def _round_up(x, m):
    return -(-x // m) * m


def _pick_row_tile(n_rows, lanes, dtype):
    itemsize = jnp.dtype(dtype).itemsize
    sub = max(8, 32 // itemsize)             # native sublane tile: 8/16/32
    row_bytes = lanes * itemsize
    tm = max(sub, (_BLOCK_BYTE_BUDGET // max(row_bytes, 1) // sub) * sub)
    full = _round_up(n_rows, sub)
    tm = min(tm, full)
    # v7x has 2 TensorCores: give the "parallel" grid axis >=2 steps when one
    # block would be big enough for the split to be worth its step overhead.
    # (v5e/v6e are single-TC; for them fewer, bigger steps is always better.)
    if tm >= full and full * row_bytes >= _MIN_SPLIT_BYTES:
        tm = _round_up(pl.cdiv(n_rows, 2), sub)
    return tm


def _make_seg(c, lanes=128):
    # seg[i, j] = 1 if lanes i and j belong to the same length-c segment.
    idx = jnp.arange(lanes) // c
    return (idx[:, None] == idx[None, :]).astype(jnp.bfloat16)


# ---------------------------------------------------------------------------
# pallas_call wrappers
# ---------------------------------------------------------------------------

def _ln_plain_call(x2, weight):
    n_rows, lanes = x2.shape
    tm = _pick_row_tile(n_rows, lanes, x2.dtype)
    grid = (pl.cdiv(n_rows, tm),)            # partial tail block is masked
    return pl.pallas_call(
        _bias_free_ln_kernel,
        out_shape=jax.ShapeDtypeStruct((n_rows, lanes), x2.dtype),
        grid_spec=pltpu.PrefetchScalarGridSpec(
            num_scalar_prefetch=0,
            grid=grid,
            in_specs=[
                pl.BlockSpec((tm, lanes), lambda i: (i, 0)),
                pl.BlockSpec((1, lanes), lambda i: (0, 0)),
            ],
            out_specs=pl.BlockSpec((tm, lanes), lambda i: (i, 0)),
        ),
        compiler_params=pltpu.CompilerParams(
            dimension_semantics=("parallel",),
            vmem_limit_bytes=_VMEM_LIMIT,
        ),
    )(x2, weight.reshape(1, lanes))


def _ln_packed_call(x2, weight, c, p):
    n, _ = x2.shape
    n_rows = n // p
    lanes = p * c                            # == 128
    xk = x2.reshape(n_rows, lanes)           # contiguous row-major: free reshape
    wk = jnp.tile(weight, p).reshape(1, lanes)
    seg = _make_seg(c, lanes)
    tm = _pick_row_tile(n_rows, lanes, x2.dtype)
    grid = (pl.cdiv(n_rows, tm),)
    kernel = functools.partial(
        _bias_free_ln_packed_kernel, c=c,
        x_exact_bf16=(x2.dtype == jnp.bfloat16))
    out = pl.pallas_call(
        kernel,
        out_shape=jax.ShapeDtypeStruct((n_rows, lanes), x2.dtype),
        grid_spec=pltpu.PrefetchScalarGridSpec(
            num_scalar_prefetch=0,
            grid=grid,
            in_specs=[
                pl.BlockSpec((tm, lanes), lambda i: (i, 0)),
                pl.BlockSpec((1, lanes), lambda i: (0, 0)),
                pl.BlockSpec((lanes, lanes), lambda i: (0, 0)),
            ],
            out_specs=pl.BlockSpec((tm, lanes), lambda i: (i, 0)),
        ),
        compiler_params=pltpu.CompilerParams(
            dimension_semantics=("parallel",),
            vmem_limit_bytes=_VMEM_LIMIT,
        ),
    )(xk, wk, seg)
    return out.reshape(n, c)


def bias_free_layernorm(x, weight):
    """BiasFree LayerNorm over the last dim: x / sqrt(var(x) + 1e-5) * weight."""
    orig_shape = x.shape
    c = orig_shape[-1]
    assert weight.shape == (c,)

    x2 = x.reshape(-1, c)
    n = x2.shape[0]
    if n == 0:
        return x

    pack = (c < 128) and (128 % c == 0)
    p = 128 // c if pack else 1
    n_bulk = (n // p) * p if pack else 0

    if pack and n_bulk > 0:
        out_bulk = _ln_packed_call(x2[:n_bulk], weight, c, p)
        if n_bulk == n:
            out2 = out_bulk
        else:
            # Ragged tail of <= p-1 rows: handle outside the kernel (tiny) so
            # the bulk keeps full-width unmasked 128-lane stores.
            tail = x2[n_bulk:].astype(jnp.float32)
            mu = jnp.mean(tail, axis=-1, keepdims=True)
            var = jnp.mean((tail - mu) ** 2, axis=-1, keepdims=True)
            out_tail = (tail * jax.lax.rsqrt(var + _EPS)
                        * weight.astype(jnp.float32)).astype(x.dtype)
            out2 = jnp.concatenate([out_bulk, out_tail], axis=0)
    else:
        out2 = _ln_plain_call(x2, weight)

    return out2.reshape(orig_shape)


# ---------------------------------------------------------------------------
# Reference + tests
# ---------------------------------------------------------------------------

def _reference(x, weight):
    x = x.astype(jnp.float32)
    mu = jnp.mean(x, axis=-1, keepdims=True)
    var = jnp.mean((x - mu) ** 2, axis=-1, keepdims=True)     # unbiased=False
    return x / jnp.sqrt(var + _EPS) * weight.astype(jnp.float32)


if __name__ == "__main__":
    key = jax.random.PRNGKey(0)
    k1, k2, k3, k4, k5 = jax.random.split(key, 5)

    # Case 1: hcan-style (batch, tokens, C) with C=32 -> lane-dense packed path.
    x1 = jax.random.normal(k1, (2, 64, 32), dtype=jnp.float32)
    w1 = 1.0 + 0.1 * jax.random.normal(k2, (32,), dtype=jnp.float32)
    y1 = jax.block_until_ready(bias_free_layernorm(x1, w1))
    assert jnp.allclose(y1, _reference(x1, w1), atol=2e-5, rtol=2e-5), "case1 mismatch"

    # Case 2: C=128 (already lane-dense) -> plain per-row path; weight=ones.
    x2 = jax.random.normal(k3, (2, 8, 128), dtype=jnp.float32)
    w2 = jnp.ones((128,), dtype=jnp.float32)
    y2 = jax.block_until_ready(bias_free_layernorm(x2, w2))
    assert jnp.allclose(y2, _reference(x2, w2), atol=2e-5, rtol=2e-5), "case2 mismatch"

    # Case 3: C not a multiple of 128 and row count not a multiple of the tile
    #         -> plain path with a masked tail block (no host padding copies).
    x3 = jax.random.normal(k4, (3, 5, 160), dtype=jnp.float32)
    w3 = jnp.ones((160,), dtype=jnp.float32)
    y3 = jax.block_until_ready(bias_free_layernorm(x3, w3))
    assert jnp.allclose(y3, _reference(x3, w3), atol=2e-5, rtol=2e-5), "case3 mismatch"

    # Case 4: C=32 with n % p != 0 -> packed bulk + tiny ragged-tail path.
    x4 = jax.random.normal(k5, (1, 13, 32), dtype=jnp.float32)
    y4 = jax.block_until_ready(bias_free_layernorm(x4, w1))
    assert jnp.allclose(y4, _reference(x4, w1), atol=2e-5, rtol=2e-5), "case4 mismatch"

    # Case 5: bf16 input, C=64 -> packed path, skip-lo mean matmul.
    x5 = jax.random.normal(k1, (2, 32, 64), dtype=jnp.bfloat16)
    w5 = jnp.ones((64,), dtype=jnp.float32)
    y5 = jax.block_until_ready(bias_free_layernorm(x5, w5))
    assert jnp.allclose(y5.astype(jnp.float32), _reference(x5, w5),
                        atol=5e-2, rtol=5e-2), "case5 mismatch"

    print("KERNEL_OK")
</pallas_src>

<mosaic_0001>
module attributes {stable_mosaic.version = 11 : i64} {
  func.func @_bias_free_ln_packed_kernel(%arg0: i32, %arg1: memref<32x128xf32, #tpu.memory_space<vmem>>, %arg2: memref<1x128xf32, #tpu.memory_space<vmem>>, %arg3: memref<128x128xbf16, #tpu.memory_space<vmem>>, %arg4: memref<32x128xf32, #tpu.memory_space<vmem>>) attributes {dimension_semantics = [#tpu.dimension_semantics<parallel>], iteration_bounds = array<i64: 1>, scalar_prefetch = 0 : i64, scratch_operands = 0 : i64, tpu.core_type = #tpu.core_type<tc>, window_params = [{transform_indices = @transform_0, window_bounds = array<i64: 32, 128>}, {pipeline_mode = #tpu.pipeline_mode<synchronous>, transform_indices = @transform_1, window_bounds = array<i64: 1, 128>}, {pipeline_mode = #tpu.pipeline_mode<synchronous>, transform_indices = @transform_2, window_bounds = array<i64: 128, 128>}, {transform_indices = @transform_3, window_bounds = array<i64: 32, 128>}]} {
    %c0 = arith.constant 0 : index
    %c0_0 = arith.constant 0 : index
    %0 = vector.load %arg1[%c0, %c0_0] : memref<32x128xf32, #tpu.memory_space<vmem>>, vector<32x128xf32>
    %c0_1 = arith.constant 0 : index
    %c0_2 = arith.constant 0 : index
    %1 = vector.load %arg3[%c0_1, %c0_2] : memref<128x128xbf16, #tpu.memory_space<vmem>>, vector<128x128xbf16>
    %2 = arith.truncf %0 : vector<32x128xf32> to vector<32x128xbf16>
    %cst = arith.constant dense<0.000000e+00> : vector<32x128xf32>
    %3 = tpu.matmul %2, %1, %cst {dimension_numbers = #tpu.dot_dimension_numbers<[1], [0], [0], [1], [0, 0, 1, 1], [], []>} : vector<32x128xbf16>, vector<128x128xbf16>, vector<32x128xf32> -> vector<32x128xf32>
    %4 = arith.extf %2 : vector<32x128xbf16> to vector<32x128xf32>
    %5 = arith.subf %0, %4 : vector<32x128xf32>
    %6 = arith.truncf %5 : vector<32x128xf32> to vector<32x128xbf16>
    %cst_3 = arith.constant dense<0.000000e+00> : vector<32x128xf32>
    %7 = tpu.matmul %6, %1, %cst_3 {dimension_numbers = #tpu.dot_dimension_numbers<[1], [0], [0], [1], [0, 0, 1, 1], [], []>} : vector<32x128xbf16>, vector<128x128xbf16>, vector<32x128xf32> -> vector<32x128xf32>
    %8 = arith.addf %3, %7 : vector<32x128xf32>
    %cst_4 = arith.constant 3.125000e-02 : f32
    %9 = vector.broadcast %cst_4 : f32 to vector<32x128xf32>
    %10 = arith.mulf %8, %9 : vector<32x128xf32>
    %11 = arith.subf %0, %10 : vector<32x128xf32>
    %12 = arith.mulf %11, %11 : vector<32x128xf32>
    %13 = arith.truncf %12 : vector<32x128xf32> to vector<32x128xbf16>
    %cst_5 = arith.constant dense<0.000000e+00> : vector<32x128xf32>
    %14 = tpu.matmul %13, %1, %cst_5 {dimension_numbers = #tpu.dot_dimension_numbers<[1], [0], [0], [1], [0, 0, 1, 1], [], []>} : vector<32x128xbf16>, vector<128x128xbf16>, vector<32x128xf32> -> vector<32x128xf32>
    %15 = arith.extf %13 : vector<32x128xbf16> to vector<32x128xf32>
    %16 = arith.subf %12, %15 : vector<32x128xf32>
    %17 = arith.truncf %16 : vector<32x128xf32> to vector<32x128xbf16>
    %cst_6 = arith.constant dense<0.000000e+00> : vector<32x128xf32>
    %18 = tpu.matmul %17, %1, %cst_6 {dimension_numbers = #tpu.dot_dimension_numbers<[1], [0], [0], [1], [0, 0, 1, 1], [], []>} : vector<32x128xbf16>, vector<128x128xbf16>, vector<32x128xf32> -> vector<32x128xf32>
    %19 = arith.addf %14, %18 : vector<32x128xf32>
    %cst_7 = arith.constant 3.125000e-02 : f32
    %20 = vector.broadcast %cst_7 : f32 to vector<32x128xf32>
    %21 = arith.mulf %19, %20 : vector<32x128xf32>
    %cst_8 = arith.constant 9.99999974E-6 : f32
    %22 = vector.broadcast %cst_8 : f32 to vector<32x128xf32>
    %23 = arith.addf %21, %22 : vector<32x128xf32>
    %24 = math.rsqrt %23 : vector<32x128xf32>
    %25 = arith.mulf %0, %24 : vector<32x128xf32>
    %c0_9 = arith.constant 0 : index
    %c0_10 = arith.constant 0 : index
    %26 = vector.load %arg2[%c0_9, %c0_10] : memref<1x128xf32, #tpu.memory_space<vmem>>, vector<1x128xf32>
    %27 = vector.broadcast %26 : vector<1x128xf32> to vector<32x128xf32>
    %28 = arith.mulf %25, %27 : vector<32x128xf32>
    %c0_11 = arith.constant 0 : index
    %c0_12 = arith.constant 0 : index
    %29 = vector.load %arg4[%c0_11, %c0_12] : memref<32x128xf32, #tpu.memory_space<vmem>>, vector<32x128xf32>
    tpu.vector_store %arg4[%c0_11, %c0_12], %28 {strides = array<i32>} : memref<32x128xf32, #tpu.memory_space<vmem>>, vector<32x128xf32>,
    return
  }
  func.func @transform_0(%arg0: i32) -> (i32, i32) {
    %c0_i32 = arith.constant 0 : i32
    %c0_i32_0 = arith.constant 0 : i32
    return %arg0, %c0_i32 : i32, i32
  }
  func.func @transform_1(%arg0: i32) -> (i32, i32) {
    %c0_i32 = arith.constant 0 : i32
    %c0_i32_0 = arith.constant 0 : i32
    %c0_i32_1 = arith.constant 0 : i32
    return %c0_i32, %c0_i32_0 : i32, i32
  }
  func.func @transform_2(%arg0: i32) -> (i32, i32) {
    %c0_i32 = arith.constant 0 : i32
    %c0_i32_0 = arith.constant 0 : i32
    %c0_i32_1 = arith.constant 0 : i32
    return %c0_i32, %c0_i32_0 : i32, i32
  }
  func.func @transform_3(%arg0: i32) -> (i32, i32) {
    %c0_i32 = arith.constant 0 : i32
    %c0_i32_0 = arith.constant 0 : i32
    return %arg0, %c0_i32 : i32, i32
  }
}

</mosaic_0001>

<bundles_post_ra>
// kernel: tpu_custom_call.1
= control target key start
LH: loop header
LB: loop body
LE: loop exit
PB: predicated region body
PF: predicated region fallthrough
CT: control target
= control target key end

     0   :  { %8 = vsyncpa [#allocation3], 0  ;;  %s801_s0 = inlined_call_operand.hbm [shape: f32[32,128], index: 0, kind: input, shape index: {}]   ;;  %s802_s1 = inlined_call_operand.vmem [shape: f32[1,128], index: 1, kind: input, shape index: {}]   ;;  %s803_s2 = inlined_call_operand.hbm [shape: bf16[128,128], index: 2, kind: input, shape index: {}]   ;;  %s804_s3 = inlined_call_operand.hbm [shape: f32[32,128], index: 3, kind: output, shape index: {}]  }
   0x1   :  { %9 = vsyncpa [#allocation6], 0 }
   0x2   :  { %10 = vsyncpa [#allocation4], 0  ;;  %s625_s12 = smov [#allocation2]   ;;  %s553_s16 = scalar_lea.hbm %s801_s0, 512 }
   0x3   :  { %s16_s13 = sshll.u32 %s625_s12, 4  ;;  %p554_p0 = scmp.ne.s32.totalorder %s801_s0, %s553_s16  ;;  %s17_s13 = int_to_ptr.vmem [resolvable:$true] %s16_s13 }
   0x4   :  { %p557_p1 = scmp.lt.u32.totalorder %s553_s16, %s801_s0 }
   0x6   :  { %p559_p2 = pnand %p557_p1, %p554_p0 }
   0x8   :  { %562 = shalt.err (!%p559_p2)
}
   0x9   :  { %s563_s21 = scalar_lea.vmem %s17_s13, 512  ;;  %p568_p4 = scmp.lt.s32.totalorder %s17_s13, %s17_s13 }
   0xa   :  { %p564_p3 = scmp.ne.s32.totalorder %s17_s13, %s563_s21  ;;  %p569_p5 = scmp.lt.s32.totalorder %s563_s21, %s563_s21 }
   0xc   :  { %p570_p6 = por %p569_p5, %p568_p4 }
   0xe   :  { %p571_p7 = pnand %p570_p6, %p564_p3 }
  0x10   :  { %574 = shalt.err (!%p571_p7)
}
  0x11   :  { %s626_s22 = smov 128   ;;  %s627_s23 = smov 8  }
  0x12   :  { %22 = dma.hbm_to_vmem [thread:$0]  %s801_s0, 512, %s17_s13, [#allocation3], %s626_s22, %s626_s22, %s627_s23  }
  0x13   :  { %s628_s26 = smov [#allocation5]   ;;  %s575_s30 = scalar_lea.hbm %s803_s2, 1024 }
  0x14   :  { %s30_s27 = sshll.u32 %s628_s26, 4  ;;  %p576_p8 = scmp.ne.s32.totalorder %s803_s2, %s575_s30  ;;  %s31_s27 = int_to_ptr.vmem [resolvable:$true] %s30_s27 }
  0x15   :  { %p579_p9 = scmp.lt.u32.totalorder %s575_s30, %s803_s2 }
  0x17   :  { %p581_p10 = pnand %p579_p9, %p576_p8 }
  0x19   :  { %584 = shalt.err (!%p581_p10)
}
  0x1a   :  { %s585_s8 = scalar_lea.vmem %s31_s27, 1024  ;;  %p590_p12 = scmp.lt.s32.totalorder %s31_s27, %s31_s27 }
  0x1b   :  { %p586_p11 = scmp.ne.s32.totalorder %s31_s27, %s585_s8  ;;  %p591_p13 = scmp.lt.s32.totalorder %s585_s8, %s585_s8 }
  0x1d   :  { %p592_p0 = por %p591_p13, %p590_p12 }
  0x1f   :  { %p593_p1 = pnand %p592_p0, %p586_p11 }
  0x21   :  { %596 = shalt.err (!%p593_p1)
}
  0x22   :  { %s629_s0 = smov 64   ;;  %s630_s9 = smov 4  }
  0x23   :  { %36 = dma.hbm_to_vmem [thread:$0]  %s803_s2, 1024, %s31_s27, [#allocation6], %s629_s0, %s629_s0, %s630_s9  }
  0x24   :  { %619 = dma.done.wait [#allocation3], 512  }
  0x25   :  { %620 = vsyncadd [#allocation3], 4294966784 }
  0x26   :  { %621 = dma.done.wait [#allocation6], 1024  }
  0x27   :  { %622 = vsyncadd [#allocation6], 4294966272  ;;  %v679_v0 = vld [vmem:[#allocation5] sm:$0xff]   ;;  %v681_v1 = vld [vmem:[#allocation5 + $0x8] sm:$0xff]   ;;  %s631_s13 = smov [#allocation7]  }
  0x28   :  { %442 = vmatprep.subr.bf16.mxu0 %v679_v0  ;;  %482 = vmatprep.subr.bf16.mxu1 %v679_v0  ;;  %v688_v2 = vld [vmem:[#allocation5 + $0x10] sm:$0xff]   ;;  %v694_v3 = vld [vmem:[#allocation5 + $0x18] sm:$0xff]   ;;  %v696_v4 = vld [vmem:[#allocation2] sm:$0xff]  ;;  %s380_s14 = sshll.u32 %s631_s13, 4  ;;  %s381_s14 = int_to_ptr.vmem [resolvable:$true] %s380_s14 }
  0x29   :  { %443 = vmatpush3.bf16.msra.mxu0 %v679_v0  ;;  %483 = vmatpush3.bf16.msra.mxu1 %v679_v0  ;;  %v698_v5 = vld [vmem:[#allocation2 + $0x8] sm:$0xff]  ;;  %v706_v9 = vld [vmem:[#allocation5 + $0x20] sm:$0xff]   ;;  %v712_v13 = vld [vmem:[#allocation2 + $0x10] sm:$0xff]  ;;  %p602_p3 = scmp.lt.s32.totalorder %s381_s14, %s381_s14 }
  0x2a   :  { %444 = vmatprep.subr.bf16.mxu0 %v681_v1  ;;  %484 = vmatprep.subr.bf16.mxu1 %v681_v1  ;;  %v64_v6 = vpack.c.bf16 %v698_v5, %v696_v4  ;;  %v714_v14 = vld [vmem:[#allocation2 + $0x18] sm:$0xff]  ;;  %v718_v15 = vld [vmem:[#allocation5 + $0x28] sm:$0xff]   ;;  %v726_v17 = vld [vmem:[#allocation5 + $0x30] sm:$0xff]  }
  0x2b   :  { %v65_v16 = vpack.c.bf16 %v714_v14, %v712_v13  ;;  %v732_v20 = vld [vmem:[#allocation5 + $0x38] sm:$0xff]  }
  0x2c   :  { %v66_v7 = vunpack.c.l.bf16 %v64_v6  ;;  %v67_v8 = vunpack.c.h.bf16 %v64_v6 }
  0x2d   :  { %445 = vmatpush3.bf16.msra.mxu0 %v681_v1  ;;  %485 = vmatpush3.bf16.msra.mxu1 %v681_v1  ;;  %v68_v18 = vunpack.c.l.bf16 %v65_v16  ;;  %v69_v19 = vunpack.c.h.bf16 %v65_v16 }
  0x2e   :  { %446 = vmatprep.subr.bf16.mxu0 %v688_v2  ;;  %486 = vmatprep.subr.bf16.mxu1 %v688_v2  ;;  %v70_v10 = vsub.f32 %v696_v4, %v66_v7  ;;  %v71_v11 = vsub.f32 %v698_v5, %v67_v8 }
  0x2f   :  { %v72_v21 = vsub.f32 %v712_v13, %v68_v18  ;;  %v73_v22 = vsub.f32 %v714_v14, %v69_v19 }
  0x30   :  { %v74_v12 = vpack.c.bf16 %v71_v11, %v70_v10 }
  0x31   :  { %447 = vmatpush3.bf16.msra.mxu0 %v688_v2  ;;  %487 = vmatpush3.bf16.msra.mxu1 %v688_v2  ;;  %v75_v23 = vpack.c.bf16 %v73_v22, %v72_v21 }
  0x32   :  { %448 = vmatprep.subr.bf16.mxu0 %v694_v3  ;;  %488 = vmatprep.subr.bf16.mxu1 %v694_v3 }
  0x33   :  { %458 = vmatprep.mubr.bf16.mxu0 %v74_v12 }
  0x35   :  { %449 = vmatpush3.bf16.msra.mxu0 %v694_v3  ;;  %489 = vmatpush3.bf16.msra.mxu1 %v694_v3 }
  0x36   :  { %450 = vmatprep.subr.bf16.mxu0 %v706_v9  ;;  %490 = vmatprep.subr.bf16.mxu1 %v706_v9 }
  0x39   :  { %451 = vmatpush3.bf16.msra.mxu0 %v706_v9  ;;  %491 = vmatpush3.bf16.msra.mxu1 %v706_v9 }
  0x3a   :  { %452 = vmatprep.subr.bf16.mxu0 %v718_v15  ;;  %492 = vmatprep.subr.bf16.mxu1 %v718_v15 }
  0x3d   :  { %453 = vmatpush3.bf16.msra.mxu0 %v718_v15  ;;  %493 = vmatpush3.bf16.msra.mxu1 %v718_v15 }
  0x3e   :  { %454 = vmatprep.subr.bf16.mxu0 %v726_v17  ;;  %494 = vmatprep.subr.bf16.mxu1 %v726_v17 }
  0x41   :  { %455 = vmatpush3.bf16.msra.mxu0 %v726_v17  ;;  %495 = vmatpush3.bf16.msra.mxu1 %v726_v17 }
  0x42   :  { %456 = vmatprep.subr.bf16.mxu0 %v732_v20  ;;  %496 = vmatprep.subr.bf16.mxu1 %v732_v20 }
  0x45   :  { %457 = vmatpush3.bf16.msra.mxu0 %v732_v20  ;;  %497 = vmatpush3.bf16.msra.mxu1 %v732_v20 }
  0x46   :  { %462 = vmatprep.subr.bf16.mxu0 %v679_v0  ;;  %502 = vmatprep.subr.bf16.mxu1 %v679_v0 }
  0x48   :  { %459 = vmatmul.mubr.bf16.vlgmr.msra.gmra.mrb[0].mxu0 %v75_v23 }
  0x49   :  { %463 = vmatpush3.bf16.msra.mxu0 %v679_v0  ;;  %478 = vmatprep.mubr.bf16.mxu0 %v64_v6 }
  0x4a   :  { %464 = vmatprep.subr.bf16.mxu0 %v681_v1 }
  0x4d   :  { %465 = vmatpush3.bf16.msra.mxu0 %v681_v1 }
  0x4e   :  { %466 = vmatprep.subr.bf16.mxu0 %v688_v2 }
  0x51   :  { %467 = vmatpush3.bf16.msra.mxu0 %v688_v2 }
  0x52   :  { %468 = vmatprep.subr.bf16.mxu0 %v694_v3 }
  0x55   :  { %469 = vmatpush3.bf16.msra.mxu0 %v694_v3 }
  0x56   :  { %470 = vmatprep.subr.bf16.mxu0 %v706_v9 }
  0x59   :  { %471 = vmatpush3.bf16.msra.mxu0 %v706_v9 }
  0x5a   :  { %472 = vmatprep.subr.bf16.mxu0 %v718_v15 }
  0x5d   :  { %473 = vmatpush3.bf16.msra.mxu0 %v718_v15 }
  0x5e   :  { %474 = vmatprep.subr.bf16.mxu0 %v726_v17 }
  0x61   :  { %475 = vmatpush3.bf16.msra.mxu0 %v726_v17 }
  0x62   :  { %476 = vmatprep.subr.bf16.mxu0 %v732_v20 }
  0x65   :  { %477 = vmatpush3.bf16.msra.mxu0 %v732_v20 }
  0x68   :  { %479 = vmatmul.mubr.bf16.vlgmr.msra.gmra.mrb[0].mxu0 %v65_v16 }
 0x13b   :  { %v480_v24 = vpop.f32.mrb[0].mxu0 }
 0x13c   :  { %v224_v25 = vmul.f32 0.03125, %v480_v24  ;;  %v207_v26 = vpop.f32.mrb[1].mxu0 }
 0x13d   :  { %v222_v27 = vmul.f32 0.03125, %v207_v26  ;;  %v481_v28 = vpop.f32.mrb[2].mxu0 }
 0x13e   :  { %v228_v29 = vsub.f32 %v712_v13, %v224_v25  ;;  %v225_v30 = vmul.f32 0.03125, %v481_v28  ;;  %v210_v31 = vpop.f32.mrb[3].mxu0 }
 0x13f   :  { %v226_v32 = vsub.f32 %v696_v4, %v222_v27  ;;  %v223_v33 = vmul.f32 0.03125, %v210_v31 }
 0x140   :  { %v229_v34 = vsub.f32 %v714_v14, %v225_v30  ;;  %v232_v36 = vmul.f32 %v228_v29, %v228_v29 }
 0x141   :  { %v227_v35 = vsub.f32 %v698_v5, %v223_v33  ;;  %v230_v38 = vmul.f32 %v226_v32, %v226_v32 }
 0x142   :  { %v233_v37 = vmul.f32 %v229_v34, %v229_v34 }
 0x143   :  { %v231_v39 = vmul.f32 %v227_v35, %v227_v35 }
 0x144   :  { %v235_v40 = vpack.c.bf16 %v233_v37, %v232_v36 }
 0x145   :  { %v234_v41 = vpack.c.bf16 %v231_v39, %v230_v38 }
 0x146   :  { %v239_v42 = vunpack.c.h.bf16 %v235_v40  ;;  %v238_v43 = vunpack.c.l.bf16 %v235_v40 }
 0x147   :  { %v236_v44 = vunpack.c.l.bf16 %v234_v41  ;;  %v237_v45 = vunpack.c.h.bf16 %v234_v41 }
 0x148   :  { %v243_v46 = vsub.f32 %v233_v37, %v239_v42  ;;  %v242_v47 = vsub.f32 %v232_v36, %v238_v43 }
 0x149   :  { %v240_v48 = vsub.f32 %v230_v38, %v236_v44  ;;  %v241_v49 = vsub.f32 %v231_v39, %v237_v45 }
 0x14a   :  { %v245_v50 = vpack.c.bf16 %v243_v46, %v242_v47 }
 0x14b   :  { %v244_v51 = vpack.c.bf16 %v241_v49, %v240_v48 }
 0x14d   :  { %498 = vmatprep.mubr.bf16.mxu1 %v244_v51 }
 0x14e   :  { %499 = vmatmul.mubr.bf16.vlgmr.msra.gmra.mrb[0].mxu1 %v245_v50 }
 0x14f   :  { %503 = vmatpush3.bf16.msra.mxu1 %v679_v0  ;;  %518 = vmatprep.mubr.bf16.mxu1 %v234_v41 }
 0x150   :  { %504 = vmatprep.subr.bf16.mxu1 %v681_v1 }
 0x153   :  { %505 = vmatpush3.bf16.msra.mxu1 %v681_v1  ;;  %v401_v1 = vld [vmem:[%s802_s1] ss:$0 sm:$0xff]  ;;  %s597_s1 = scalar_lea.vmem %s381_s14, 512 }
 0x154   :  { %506 = vmatprep.subr.bf16.mxu1 %v688_v2  ;;  %p598_p2 = scmp.ne.s32.totalorder %s381_s14, %s597_s1  ;;  %p603_p4 = scmp.lt.s32.totalorder %s597_s1, %s597_s1 }
 0x156   :  { %p604_p5 = por %p603_p4, %p602_p3 }
 0x157   :  { %507 = vmatpush3.bf16.msra.mxu1 %v688_v2 }
 0x158   :  { %508 = vmatprep.subr.bf16.mxu1 %v694_v3  ;;  %p605_p6 = pnand %p604_p5, %p598_p2 }
 0x15b   :  { %509 = vmatpush3.bf16.msra.mxu1 %v694_v3 }
 0x15c   :  { %510 = vmatprep.subr.bf16.mxu1 %v706_v9 }
 0x15f   :  { %511 = vmatpush3.bf16.msra.mxu1 %v706_v9 }
 0x160   :  { %512 = vmatprep.subr.bf16.mxu1 %v718_v15 }
 0x163   :  { %513 = vmatpush3.bf16.msra.mxu1 %v718_v15 }
 0x164   :  { %514 = vmatprep.subr.bf16.mxu1 %v726_v17 }
 0x167   :  { %515 = vmatpush3.bf16.msra.mxu1 %v726_v17 }
 0x168   :  { %516 = vmatprep.subr.bf16.mxu1 %v732_v20 }
 0x16b   :  { %517 = vmatpush3.bf16.msra.mxu1 %v732_v20 }
 0x16e   :  { %519 = vmatmul.mubr.bf16.vlgmr.msra.gmra.mrb[0].mxu1 %v235_v40 }
 0x241   :  { %v520_v52 = vpop.f32.mrb[0].mxu1 }
 0x242   :  { %v346_v53 = vmul.f32 0.03125, %v520_v52  ;;  %v329_v54 = vpop.f32.mrb[1].mxu1 }
 0x243   :  { %v344_v55 = vmul.f32 0.03125, %v329_v54  ;;  %v521_v56 = vpop.f32.mrb[2].mxu1 }
 0x244   :  { %v350_v57 = vadd.f32 1e-05, %v346_v53  ;;  %v347_v58 = vmul.f32 0.03125, %v521_v56  ;;  %v332_v59 = vpop.f32.mrb[3].mxu1 }
 0x245   :  { %v348_v60 = vadd.f32 1e-05, %v344_v55  ;;  %v345_v61 = vmul.f32 0.03125, %v332_v59 }
 0x246   :  { %545 = vrsqrt.f32 %v350_v57  ;;  %v351_v62 = vadd.f32 1e-05, %v347_v58 }
 0x247   :  { %547 = vrsqrt.f32 %v348_v60  ;;  %v349_v63 = vadd.f32 1e-05, %v345_v61 }
 0x248   :  { %549 = vrsqrt.f32 %v351_v62 }
 0x249   :  { %551 = vrsqrt.f32 %v349_v63 }
 0x250   :  { %v546_v0 = vpop.eup %545 }
 0x251   :  { %v548_v2 = vpop.eup %547  ;;  %v358_v3 = vmul.f32 %v546_v0, %v712_v13 }
 0x252   :  { %v550_v6 = vpop.eup %549  ;;  %v356_v7 = vmul.f32 %v548_v2, %v696_v4 }
 0x253   :  { %v552_v8 = vpop.eup %551  ;;  %v359_v9 = vmul.f32 %v550_v6, %v714_v14  ;;  %v369_v10 = vmul.f32 %v401_v1, %v358_v3 }
 0x254   :  { %v357_v11 = vmul.f32 %v552_v8, %v698_v5  ;;  %v367_v12 = vmul.f32 %v401_v1, %v356_v7 }
 0x255   :  { %v370_v15 = vmul.f32 %v401_v1, %v359_v9  ;;  %373 = vst [vmem:[#allocation7 + $0x10] sm:$0xff] %v369_v10 }
 0x256   :  { %v368_v16 = vmul.f32 %v401_v1, %v357_v11  ;;  %371 = vst [vmem:[#allocation7] sm:$0xff] %v367_v12 }
 0x257   :  { %374 = vst [vmem:[#allocation7 + $0x18] sm:$0xff] %v370_v15 }
 0x258   :  { %372 = vst [vmem:[#allocation7 + $0x8] sm:$0xff] %v368_v16 }
 0x259   :  { %608 = shalt.err (!%p605_p6)
}
 0x25a   :  { %s609_s17 = scalar_lea.hbm %s804_s3, 512 }
 0x25b   :  { %p610_p7 = scmp.ne.s32.totalorder %s804_s3, %s609_s17  ;;  %p613_p8 = scmp.lt.u32.totalorder %s609_s17, %s804_s3 }
 0x25d   :  { %p615_p9 = pnand %p613_p8, %p610_p7 }
 0x25f   :  { %618 = shalt.err (!%p615_p9)
}
 0x260   :  { %386 = dma.vmem_to_hbm [thread:$0]  %s381_s14, 512, %s804_s3, [#allocation4], %s626_s22, %s626_s22, %s627_s23  }
 0x261   :  { %623 = dma.done.wait [#allocation4], 512  }
 0x262   :  { %624 = vsyncadd [#allocation4], 4294966784 }
 0x263   :  { %390 = vsyncpa [#allocation3], 1 }
 0x264   :  { %391 = vsyncpa [#allocation6], 1 }
 0x265   :  { %392 = vsyncpa [#allocation4], 1 }

</bundles_post_ra>
